<compile_context>
chip_gen: v5e
topology: v5e:2x2
jax: 0.10.0
libtpu: 0.0.40
codegen_flags: <defaults>
</compile_context>

<pallas_src>
import itertools
import math

import jax
import jax.numpy as jnp
from jax.experimental import pallas as pl
from jax.experimental.pallas import tpu as pltpu

_MIB = 2 ** 20


def _round_up(x, m):
    return -(-x // m) * m


def _padded_bytes(shape, dtype):
    """Approximate VMEM footprint of one buffer (lane/sublane tile padding)."""
    itemsize = jnp.dtype(dtype).itemsize
    sublane_rows = 8 * max(1, 4 // itemsize)  # 8 rows f32, 16 bf16, 32 int8/fp8
    dims = list(shape)
    dims[-1] = _round_up(dims[-1], 128)
    if len(dims) >= 2:
        dims[-2] = _round_up(dims[-2], sublane_rows)
    return math.prod(dims) * itemsize


def _tpu_vmem_capacity_bytes():
    try:
        info = pltpu.get_tpu_info()
        cap = getattr(info, "vmem_capacity_bytes", None)
        if cap:
            return int(cap)
    except Exception:
        pass
    return 64 * _MIB  # conservative (v7x-sized) fallback


def _vmem_limit(step_bytes, cap_bytes):
    return int(min(cap_bytes, max(32 * _MIB, 2 * step_bytes)))


def _choose_batch_block(b, footprint_per_elem, budget, traffic_per_elem,
                        target=2 * _MIB):
    """Largest-useful batch block TB (divisor of b) under the VMEM budget."""
    divs = [d for d in range(1, b + 1) if b % d == 0]
    feas = [d for d in divs if d * footprint_per_elem <= budget] or [1]
    tb = None
    for d in feas:                       # smallest TB reaching ~target MiB/step
        if d * traffic_per_elem >= target:
            tb = d
            break
    if tb is None:
        tb = feas[-1]
    # Keep >=2 grid steps whenever possible so both v7x TensorCores get work.
    if b >= 2 and b // tb < 2:
        smaller = [d for d in feas if d <= b // 2]
        tb = smaller[-1] if smaller else 1
    return tb


# ----------------------------------------------------------------------------
# Kernels
# ----------------------------------------------------------------------------
def _fused_slice_store_kernel(perms, dim, c):
    """All perms in one step; r! lane-aligned slice stores (C % 128 == 0)."""
    axes_list = [(0,) + tuple(a + 1 for a in p) + (dim + 1,) for p in perms]

    def kernel(x_ref, o_ref):
        x = x_ref[...]                                   # (TB, *obj, C)
        for idx, axes in enumerate(axes_list):
            sl = (slice(None),) * (dim + 1) + (pl.ds(idx * c, c),)
            o_ref[sl] = jnp.transpose(x, axes)           # unmasked vst (128-mult)

    return kernel


def _fused_concat_kernel(perms, dim):
    """All perms in one step; single lane-dense concatenated store."""
    axes_list = [(0,) + tuple(a + 1 for a in p) + (dim + 1,) for p in perms]

    def kernel(x_ref, o_ref):
        x = x_ref[...]
        o_ref[...] = jnp.concatenate(
            [jnp.transpose(x, axes) for axes in axes_list], axis=-1)

    return kernel


def _channel_tiled_kernel(perms, dim):
    """One (perm, channel-block) per grid step; perm index = grid axis 2."""
    axes_list = [(0,) + tuple(a + 1 for a in p) + (dim + 1,) for p in perms]

    def kernel(x_ref, o_ref):
        p_idx = pl.program_id(2)
        for idx, axes in enumerate(axes_list):

            @pl.when(p_idx == idx)
            def _(axes=axes):
                o_ref[...] = jnp.transpose(x_ref[...], axes)

    return kernel


def _obj_tiled_kernel(perms, dim, c):
    """Object-axis tiled fallback; perm index = last grid axis, output block
    resident across the perm axis and written slice-by-slice."""
    axes_list = [tuple(p) + (dim,) for p in perms]

    def kernel(x_ref, o_ref):
        p_idx = pl.program_id(dim + 1)
        for idx, axes in enumerate(axes_list):

            @pl.when(p_idx == idx)
            def _(idx=idx, axes=axes):
                sl = (slice(None),) * dim + (pl.ds(idx * c, c),)
                o_ref[sl] = jnp.transpose(x_ref[...], axes)

    return kernel


# ----------------------------------------------------------------------------
# Wrapper
# ----------------------------------------------------------------------------
def permutation_forward(x, dim, *, block_budget_bytes=None):
    """Pallas equivalent of Permutation(dim).forward(x)."""
    if dim <= 1:
        return x

    nr_dims = x.ndim
    start_dim = nr_dims - 1 - dim
    assert start_dim > 0, "Permutation needs at least one leading batch axis"

    batch_shape = x.shape[:start_dim]
    obj_shape = x.shape[start_dim:-1]
    assert len(set(obj_shape)) == 1, (
        f"Permutation requires all {dim} object axes to have equal size, "
        f"got {obj_shape}")
    n = obj_shape[0]
    c = x.shape[-1]
    b = int(math.prod(batch_shape))
    dtype = x.dtype
    itemsize = jnp.dtype(dtype).itemsize

    perms = list(itertools.permutations(range(dim)))
    n_perms = len(perms)
    out_c = c * n_perms

    # Generation-aware VMEM budgets.
    vmem_cap = _tpu_vmem_capacity_bytes()
    vmem_cap_limit = int(min(100 * _MIB, vmem_cap - 16 * _MIB))
    if block_budget_bytes is None:
        block_budget_bytes = 40 * _MIB if vmem_cap >= 100 * _MIB else 20 * _MIB
    budget = int(block_budget_bytes)

    # Collapse leading batch axes into a single axis (pure reshape glue).
    xf = x.reshape((b,) + obj_shape + (c,))
    out_shape_flat = (b,) + obj_shape + (out_c,)
    zeros = (0,) * (dim + 1)

    # Pure bandwidth op: read 1x, write r! x.
    cost = pl.CostEstimate(
        flops=0, transcendentals=0,
        bytes_accessed=int((1 + n_perms) * xf.size * itemsize))

    per_in = _padded_bytes(obj_shape + (c,), dtype)
    per_out = _padded_bytes(obj_shape + (out_c,), dtype)
    fused_elem = 2 * (per_in + per_out)   # double-buffered in+out per batch elem

    if fused_elem <= budget:
        # ---- Path 1: fused, batch-blocked. All perms per step.
        tb = _choose_batch_block(b, fused_elem, budget, per_in + per_out)
        nb = b // tb
        step_bytes = tb * fused_elem
        kernel = (_fused_slice_store_kernel(perms, dim, c) if c % 128 == 0
                  else _fused_concat_kernel(perms, dim))
        # TODO(synk): when b == 1 one v7x TensorCore idles; an object-axis
        # parallel split would need perm-dependent input maps (see Path 3).
        out = pl.pallas_call(
            kernel,
            out_shape=jax.ShapeDtypeStruct(out_shape_flat, dtype),
            grid=(nb,),
            in_specs=[pl.BlockSpec((tb,) + obj_shape + (c,),
                                   lambda i: (i,) + zeros)],
            out_specs=pl.BlockSpec((tb,) + obj_shape + (out_c,),
                                   lambda i: (i,) + zeros),
            compiler_params=pltpu.CompilerParams(
                dimension_semantics=("parallel",),
                vmem_limit_bytes=_vmem_limit(step_bytes, vmem_cap_limit)),
            cost_estimate=cost,
        )(xf)

    elif c % 128 == 0 and 4 * _padded_bytes(obj_shape + (128,), dtype) <= budget:
        # ---- Path 2: channel tiling (tc % 128 == 0, tc | C) + perm grid axis,
        #      batch-blocked. Input index_map independent of perm -> re-fetch
        #      elided across the innermost perm axis.
        m = c // 128
        tc = 128
        for d in range(m, 0, -1):
            if m % d == 0 and 4 * _padded_bytes(obj_shape + (128 * d,), dtype) <= budget:
                tc = 128 * d
                break
        n_cblk = c // tc
        blk_elem = _padded_bytes(obj_shape + (tc,), dtype)
        tb = _choose_batch_block(b, 4 * blk_elem, budget, blk_elem)
        nb = b // tb
        step_bytes = 4 * tb * blk_elem
        perm_sem = "parallel" if nb * n_cblk < 2 else "arbitrary"

        def in_map(i, cb, p):
            return (i,) + (0,) * dim + (cb,)

        def out_map(i, cb, p):
            return (i,) + (0,) * dim + (p * n_cblk + cb,)

        out = pl.pallas_call(
            _channel_tiled_kernel(perms, dim),
            out_shape=jax.ShapeDtypeStruct(out_shape_flat, dtype),
            grid=(nb, n_cblk, n_perms),
            in_specs=[pl.BlockSpec((tb,) + obj_shape + (tc,), in_map)],
            out_specs=pl.BlockSpec((tb,) + obj_shape + (tc,), out_map),
            compiler_params=pltpu.CompilerParams(
                dimension_semantics=("parallel", "parallel", perm_sem),
                vmem_limit_bytes=_vmem_limit(step_bytes, vmem_cap_limit)),
            cost_estimate=cost,
        )(xf)

    else:
        # ---- Path 3: object-axis tiling fallback (huge blocks, any C).
        # All object axes of in/out are tiled at the same tile size tn; the
        # input block index is the perm-permuted output block index, and the
        # output block (full out_c channels) stays resident across the
        # innermost perm axis while each perm writes its channel slice.
        candidates = [d for d in range(n, 0, -1)
                      if n % d == 0 and (d % 8 == 0 or d == n)]
        if not candidates:
            candidates = [n]
        tn = candidates[-1]
        for d in candidates:
            in_b = _padded_bytes((d,) * dim + (c,), dtype)
            out_b = _padded_bytes((d,) * dim + (out_c,), dtype)
            if 2 * (in_b + out_b) <= budget:
                tn = d
                break
        in_blk = _padded_bytes((tn,) * dim + (c,), dtype)
        out_blk = _padded_bytes((tn,) * dim + (out_c,), dtype)
        step_bytes = 2 * (in_blk + out_blk)
        n_oblk = n // tn

        inv_perms = []
        for p in perms:
            inv = [0] * dim
            for k, v in enumerate(p):
                inv[v] = k
            inv_perms.append(tuple(inv))

        def in_map(i, *rest):
            js = rest[:dim]
            p_idx = rest[dim]
            idxs = []
            for d_ax in range(dim):
                v = js[inv_perms[0][d_ax]]
                for k in range(1, n_perms):
                    v = jnp.where(p_idx == k, js[inv_perms[k][d_ax]], v)
                idxs.append(v)
            return (i,) + tuple(idxs) + (0,)

        def out_map(i, *rest):
            js = rest[:dim]
            return (i,) + tuple(js) + (0,)

        out = pl.pallas_call(
            _obj_tiled_kernel(perms, dim, c),
            out_shape=jax.ShapeDtypeStruct(out_shape_flat, dtype),
            grid=(b,) + (n_oblk,) * dim + (n_perms,),
            in_specs=[pl.BlockSpec((None,) + (tn,) * dim + (c,), in_map)],
            out_specs=pl.BlockSpec((None,) + (tn,) * dim + (out_c,), out_map),
            compiler_params=pltpu.CompilerParams(
                # perm axis must stay "arbitrary": the output block is resident
                # (revisited) across it.
                dimension_semantics=("parallel",) * (dim + 1) + ("arbitrary",),
                vmem_limit_bytes=_vmem_limit(step_bytes, vmem_cap_limit)),
            cost_estimate=cost,
        )(xf)

    return out.reshape(batch_shape + obj_shape + (out_c,))


def _reference(x, dim):
    """Pure-JAX port of the PyTorch forward, for correctness checking."""
    if dim <= 1:
        return x
    nr_dims = x.ndim
    index = tuple(range(nr_dims - 1))
    start_dim = nr_dims - 1 - dim
    assert start_dim > 0
    res = []
    for i in itertools.permutations(index[start_dim:]):
        p = index[:start_dim] + i + (nr_dims - 1,)
        res.append(jnp.transpose(x, p))
    return jnp.concatenate(res, axis=-1)


if __name__ == "__main__":
    key = jax.random.PRNGKey(0)
    keys = jax.random.split(key, 8)

    # Test 1: binary predicates, small non-aligned C -> Path 1 (concat store).
    B, N, C = 2, 16, 32
    x1 = jax.random.normal(keys[0], (B, N, N, C), dtype=jnp.float32)
    out1 = jax.block_until_ready(permutation_forward(x1, 2))
    assert out1.shape == (B, N, N, 2 * C), out1.shape
    assert jnp.allclose(out1, _reference(x1, 2)), "Path 1 (concat) mismatch"

    # Test 2: 128-aligned C -> Path 1 (lane-aligned slice stores).
    x2 = jax.random.normal(keys[1], (2, 16, 16, 128), dtype=jnp.float32)
    out2 = jax.block_until_ready(permutation_forward(x2, 2))
    assert out2.shape == (2, 16, 16, 256), out2.shape
    assert jnp.allclose(out2, _reference(x2, 2)), "Path 1 (aligned) mismatch"

    # Test 3: tiny budget + 128-aligned C -> Path 2 (channel/perm tiling).
    x3 = jax.random.normal(keys[2], (2, 8, 8, 256), dtype=jnp.float32)
    out3 = jax.block_until_ready(
        permutation_forward(x3, 2, block_budget_bytes=192 * 1024))
    assert out3.shape == (2, 8, 8, 512), out3.shape
    assert jnp.allclose(out3, _reference(x3, 2)), "Path 2 mismatch"

    # Test 4: tiny budget + non-aligned C -> Path 3 (object-axis tiling).
    x4 = jax.random.normal(keys[3], (2, 16, 16, 48), dtype=jnp.float32)
    out4 = jax.block_until_ready(
        permutation_forward(x4, 2, block_budget_bytes=256 * 1024))
    assert out4.shape == (2, 16, 16, 96), out4.shape
    assert jnp.allclose(out4, _reference(x4, 2)), "Path 3 mismatch"

    # Test 5: ternary predicates (dim=3, 6 permutations) -> Path 1.
    x5 = jax.random.normal(keys[4], (2, 8, 8, 8, 16), dtype=jnp.float32)
    out5 = jax.block_until_ready(permutation_forward(x5, 3))
    assert out5.shape == (2, 8, 8, 8, 96), out5.shape
    assert jnp.allclose(out5, _reference(x5, 3)), "dim=3 mismatch"

    print("KERNEL_OK")
</pallas_src>

<mosaic_0001>
module attributes {stable_mosaic.version = 11 : i64} {
  func.func @kernel(%arg0: i32, %arg1: memref<1x16x16x32xf32, #tpu.memory_space<vmem>>, %arg2: memref<1x16x16x64xf32, #tpu.memory_space<vmem>>) attributes {dimension_semantics = [#tpu.dimension_semantics<parallel>], iteration_bounds = array<i64: 2>, scalar_prefetch = 0 : i64, scratch_operands = 0 : i64, tpu.core_type = #tpu.core_type<tc>, window_params = [{transform_indices = @transform_0, window_bounds = array<i64: 1, 16, 16, 32>}, {transform_indices = @transform_1, window_bounds = array<i64: 1, 16, 16, 64>}]} {
    %c0 = arith.constant 0 : index
    %c0_0 = arith.constant 0 : index
    %c0_1 = arith.constant 0 : index
    %c0_2 = arith.constant 0 : index
    %0 = vector.load %arg1[%c0, %c0_0, %c0_1, %c0_2] : memref<1x16x16x32xf32, #tpu.memory_space<vmem>>, vector<1x16x16x32xf32>
    %1 = tpu.transpose %0, [0, 2, 1, 3] : vector<1x16x16x32xf32> -> vector<1x16x16x32xf32>
    %2 = tpu.concatenate %0, %1 in 3 : vector<1x16x16x32xf32>, vector<1x16x16x32xf32> -> vector<1x16x16x64xf32>
    %c0_3 = arith.constant 0 : index
    %c0_4 = arith.constant 0 : index
    %c0_5 = arith.constant 0 : index
    %c0_6 = arith.constant 0 : index
    %3 = vector.load %arg2[%c0_3, %c0_4, %c0_5, %c0_6] : memref<1x16x16x64xf32, #tpu.memory_space<vmem>>, vector<1x16x16x64xf32>
    tpu.vector_store %arg2[%c0_3, %c0_4, %c0_5, %c0_6], %2 {strides = array<i32>} : memref<1x16x16x64xf32, #tpu.memory_space<vmem>>, vector<1x16x16x64xf32>,
    return
  }
  func.func @transform_0(%arg0: i32) -> (i32, i32, i32, i32) {
    %c0_i32 = arith.constant 0 : i32
    %c0_i32_0 = arith.constant 0 : i32
    %c0_i32_1 = arith.constant 0 : i32
    %c0_i32_2 = arith.constant 0 : i32
    return %arg0, %c0_i32, %c0_i32_0, %c0_i32_1 : i32, i32, i32, i32
  }
  func.func @transform_1(%arg0: i32) -> (i32, i32, i32, i32) {
    %c0_i32 = arith.constant 0 : i32
    %c0_i32_0 = arith.constant 0 : i32
    %c0_i32_1 = arith.constant 0 : i32
    %c0_i32_2 = arith.constant 0 : i32
    return %arg0, %c0_i32, %c0_i32_0, %c0_i32_1 : i32, i32, i32, i32
  }
}

</mosaic_0001>

<bundles_post_ra>
// kernel: tpu_custom_call.1
= control target key start
LH: loop header
LB: loop body
LE: loop exit
PB: predicated region body
PF: predicated region fallthrough
CT: control target
= control target key end

     0   :  { %6 = vsyncpa [#allocation3], 0  ;;  %s1765_s0 = inlined_call_operand.hbm [shape: f32[2,16,16,32], index: 0, kind: input, shape index: {}]   ;;  %s1766_s1 = inlined_call_operand.hbm [shape: f32[2,16,16,64], index: 1, kind: output, shape index: {}]  }
   0x1   :  { %8 = vsyncpa [#allocation3 + $0x1], 0 }
   0x2   :  { %9 = vsyncpa [#allocation4], 0 }
   0x3   :  { %11 = vsyncpa [#allocation4 + $0x1], 0  ;;  %s1085_s6 = smov 0   ;;  %s1087_s7 = smov 0  }
   0x4   :  { %s1089_s8 = smov 0   ;;  %s1091_s9 = smov 0  }
   0x5 LB: > { %s1106_s10 = sadd.s32 4294967295, %s1066_s9   ;;  %s901_s11 = sadd.s32 4294967294, %s1066_s9   ;;  %s1066_s9 = sphi %s1091_s9, %s1789_s9   ;;  %s1062_s8 = sphi %s1089_s8, %s1788_s8   ;;  %s1058_s7 = sphi %s1087_s7, %s1787_s7   ;;  %s1054_s6 = sphi %s1085_s6, %s1786_s6  }
   0x6   : > { %s1110_s12 = sadd.s32 1, %s1066_s9   ;;  %s24_s13 = sadd.s32 1, %s1062_s8 }
   0x7   : > { %s21_s14 = ssub.s32 %s1066_s9, %s1110_s12  ;;  %p31_p0 = scmp.ne.s32.totalorder %s1062_s8, %s1058_s7 }
   0x8   : > { %p22_p1 = scmp.eq.s32.totalorder %s21_s14, 0  ;;  %p32_p2 = scmp.eq.s32.totalorder %s1066_s9, 0 }
   0x9   : > { %p37_p3 = scmp.ne.s32.totalorder %s1058_s7, %s1054_s6  ;;  %p38_p4 = scmp.eq.s32.totalorder %s1106_s10, 0 }
   0xa   : > { %s1122_s15 = scalar_select %p22_p1, %s1062_s8, %s24_s13  }
   0xb   : > { %p1124_p5 = por %p32_p2, %p31_p0  ;;  %p1128_p6 = por %p38_p4, %p37_p3 }
   0xc   : > { %p61_p7 = scmp.eq.s32.totalorder %s1106_s10, 1  ;;  %p67_p8 = scmp.eq.s32.totalorder %s901_s11, 1 }
   0xd   : > { %p929_p10 = scmp.lt.s32.totalorder %s1066_s9, 2  ;;  %s87_s20 = sand.u32 1, %s1062_s8  }
   0xe   : > { %p1135_p11 = por %p61_p7, %p31_p0  ;;  %p1139_p12 = por %p67_p8, %p37_p3 }
   0xf   : > { %s915_s21 = sshll.u32 %s1066_s9, 8  ;;  %s904_s22 = sshll.u32 %s87_s20, 8 }
  0x10   : > { %s96_s25 = scalar_lea.hbm %s1765_s0, %s915_s21  ;;  %s91_s27 = scalar_lea.vmem [#allocation2], %s904_s22 }
  0x11   : > { %s97_s26 = sshll.u32 %s96_s25, 4  ;;  %s99_s28 = sshll.u32 %s91_s27, 4  ;;  %s98_s26 = int_to_ptr.hbm [resolvable:$true] %s97_s26  ;;  %s100_s28 = int_to_ptr.vmem [resolvable:$true] %s99_s28 }
  0x12   : > { %p1150_p13 = pnand %p929_p10, %p1124_p5  ;;  %p907_p0 = scmp.ge.s32.totalorder %s1066_s9, 1 }
  0x13   : > { %p107_p1 = scmp.lt.s32.totalorder %s1066_s9, 3  ;;  %s88_s30 = scalar_lea.sflag [#allocation3], %s87_s20 }
  0x14   : > { %s970_s2 = sshra.s32 %s98_s26, 4  ;;  %p974_p3 = pneg %p1150_p13  ;;  %s971_s2 = int_to_ptr.hbm [resolvable:$true] %s970_s2 }
  0x15   : > { %s972_s3 = scalar_lea.hbm %s971_s2, 256  ;;  %s977_s11 = scalar_lea.hbm %s1765_s0, 512 }
  0x16   : > { %p973_p2 = scmp.ne.s32.totalorder %s971_s2, %s972_s3  ;;  %p978_p5 = scmp.lt.s32.totalorder %s971_s2, %s1765_s0 }
  0x17   : > { %p979_p8 = scmp.lt.s32.totalorder %s977_s11, %s972_s3 }
  0x18   : > { %p975_p4 = pnand %p974_p3, %p973_p2 }
  0x19   : > { %p980_p10 = por %p979_p8, %p978_p5 }
  0x1a   : > { %p976_p7 = pneg %p975_p4 }
  0x1c   : > { %p981_p9 = pnand %p980_p10, %p976_p7 }
  0x1e   : > { %984 = shalt.err (!%p981_p9)
}
  0x1f   : > { %s1068_s16 = smov 128   ;;  %s1069_s20 = smov 8  }
  0x20   : > { %924 = dma.hbm_to_vmem [thread:$0]  (!%p1150_p13), %s98_s26, 4096, %s100_s28, %s88_s30, %s1068_s16, %s1068_s16, %s1069_s20  }
  0x21   : > { %p108_p2 = pnand %p907_p0, %p107_p1 }
  0x23   : > { %111 = sbr.rel (%p108_p2) target bundleno = 262 (0x106), region = 24 }
  0x28   : > { %s1171_s21 = sand.u32 1, %s1058_s7  }
  0x29   : > { %s908_s22 = sshll.u32 %s1171_s21, 8  ;;  %s114_s23 = scalar_lea.sflag [#allocation3], %s1171_s21 }
  0x2a   : > { %s1177_s24 = scalar_lea.vmem [#allocation2], %s908_s22 }
  0x2b   : > { %1045 = dma.done.wait (%p1128_p6), %s114_s23, 4096  }
  0x2c   : > { %1047 = vsyncadd (%p1128_p6), %s114_s23, 4294963200  ;;  %v1070_v0 = vmov 1983009808   ;;  %v1071_v2 = vmov 1934713408   ;;  %v1184_v4 = vld [vmem:[%s1177_s24] sm:$0xff] }
  0x2d   : > { %v175_v1 = vunpack.c.l.s4 %v1070_v0  ;;  %v223_v3 = vunpack.c.l.s4 %v1071_v2  ;;  %v1187_v5 = vld [vmem:[%s1177_s24 + $0x10] sm:$0xff]  ;;  %v1190_v6 = vld [vmem:[%s1177_s24 + $0x20] sm:$0xff]  ;;  %vm170_vm0 = vcmask 1047556   ;;  %v172_v43 = vrot.slane %v1184_v4, 4  ;;  %s1072_s17 = smov 32   ;;  %s1603_s25 = scalar_lea.vmem [#allocation5], %s908_s22 }
  0x2e   : > { %v1193_v7 = vld [vmem:[%s1177_s24 + $0x30] sm:$0xff]  ;;  %v1196_v8 = vld [vmem:[%s1177_s24 + $0x40] sm:$0xff]  ;;  %v169_v10 = vrot.slane %v1190_v6, 4  ;;  %v184_v44 = vrot.slane %v1187_v5, 4  ;;  %vm746_vm1 = vcmask 261120   ;;  %vm779_vm2 = vcmask 523264  }
  0x2f   : > { %v1199_v9 = vld [vmem:[%s1177_s24 + $0x50] sm:$0xff]  ;;  %v1202_v11 = vunpack.c.0.s8 %v175_v1  ;;  %v1205_v12 = vld [vmem:[%s1177_s24 + $0x60] sm:$0xff]  ;;  %v182_v14 = vrot.slane %v1193_v7, 4  ;;  %v1218_v19 = vunpack.c.0.s8 %v223_v3  ;;  %v196_v47 = vrot.slane %v1196_v8, 4  ;;  %s916_s26 = sshll.u32 %s1106_s10, 8  ;;  %s825_s10 = sshll.u32 %s1603_s25, 4  ;;  %s826_s10 = int_to_ptr.vmem [resolvable:$true] %s825_s10 }
  0x30   : > { %v1208_v13 = vld [vmem:[%s1177_s24 + $0x70] sm:$0xff]  ;;  %v1212_v15 = vld [vmem:[%s1177_s24 + $0x80] sm:$0xff]  ;;  %v171_v16 = vsel %vm170_vm0, %v169_v10, %v1184_v4  ;;  %v194_v17 = vrot.slane %v1205_v12, 4  ;;  %v208_v55 = vrot.slane %v1199_v9, 4  ;;  %s824_s29 = scalar_lea.hbm %s1766_s1, %s916_s26  ;;  %s813_s2 = scalar_lea.sflag [#allocation4], %s1171_s21 }
  0x31   : > { %v206_v18 = vrot.slane %v1208_v13, 4  ;;  %v1221_v20 = vld [vmem:[%s1177_s24 + $0x90] sm:$0xff]  ;;  %v1224_v21 = vld [vmem:[%s1177_s24 + $0xa0] sm:$0xff]  ;;  %v177_v23 = vperm.slane %v171_v16, %v1202_v11  ;;  %v183_v24 = vsel %vm170_vm0, %v182_v14, %v1187_v5  ;;  %v173_v16 = vsel %vm170_vm0, %v1190_v6, %v172_v43  ;;  %s827_s30 = sshll.u32 %s824_s29, 4  ;;  %s1020_s13 = scalar_lea.hbm %s1766_s1, 512  ;;  %s828_s30 = int_to_ptr.hbm [resolvable:$true] %s827_s30 }
  0x32   : > { %v1227_v22 = vld [vmem:[%s1177_s24 + $0xb0] sm:$0xff]  ;;  %v1233_v25 = vld [vmem:[%s1177_s24 + $0xc0] sm:$0xff]  ;;  %v282_v27 = vrot.slane %v1224_v21, 4  ;;  %v189_v29 = vperm.slane %v183_v24, %v1202_v11  ;;  %v195_v30 = vsel %vm170_vm0, %v194_v17, %v1196_v8  ;;  %v284_v43 = vrot.slane %v1212_v15, 4  ;;  %s1014_s3 = sshra.s32 %s828_s30, 4  ;;  %s1015_s3 = int_to_ptr.hbm [resolvable:$true] %s1014_s3 }
  0x33   : > { %v1236_v26 = vld [vmem:[%s1177_s24 + $0xe0] sm:$0xff]  ;;  %v294_v28 = vrot.slane %v1227_v22, 4  ;;  %v207_v31 = vsel %vm170_vm0, %v206_v18, %v1199_v9  ;;  %v1246_v32 = vld [vmem:[%s1177_s24 + $0xf0] sm:$0xff]  ;;  %v201_v34 = vperm.slane %v195_v30, %v1202_v11  ;;  %v220_v62 = vrot.slane %v177_v23, 4  ;;  %s1016_s4 = scalar_lea.hbm %s1015_s3, 256  ;;  %p1021_p0 = scmp.lt.s32.totalorder %s1015_s3, %s1766_s1 }
  0x34   : > { %1776 = vst [vmem:[#allocation8_spill] sm:$0xff] %v1236_v26  ;;  %v306_v33 = vrot.slane %v1236_v26, 4  ;;  %v213_v35 = vperm.slane %v207_v31, %v1202_v11  ;;  %v283_v36 = vsel %vm170_vm0, %v282_v27, %v1212_v15  ;;  %v218_v38 = vrot.slane %v189_v29, 4  ;;  %v1256_v39 = vld [vmem:[%s1177_s24 + $0xd0] sm:$0xff]  ;;  %p1017_p6 = scmp.ne.s32.totalorder %s1015_s3, %s1016_s4  ;;  %p1022_p1 = scmp.lt.s32.totalorder %s1020_s13, %s1016_s4 }
  0x35   : > { %1777 = vst [vmem:[#allocation9_spill] sm:$0xff] %v1246_v32  ;;  %v295_v37 = vsel %vm170_vm0, %v294_v28, %v1221_v20  ;;  %v289_v40 = vperm.slane %v283_v36, %v1202_v11  ;;  %v318_v46 = vrot.slane %v1246_v32, 4  ;;  %v244_v2 = vrot.slane %v201_v34, 4 }
  0x36   : > { %v301_v41 = vperm.slane %v295_v37, %v1202_v11  ;;  %v307_v42 = vsel %vm170_vm0, %v306_v33, %v1233_v25  ;;  %v242_v45 = vrot.slane %v213_v35, 4  ;;  %v219_v48 = vsel %vm170_vm0, %v218_v38, %v177_v23  ;;  %p1018_p9 = pnand %p1017_p6, %p1135_p11  ;;  %p1023_p3 = por %p1022_p1, %p1021_p0 }
  0x37   : > { %v332_v50 = vrot.slane %v289_v40, 4  ;;  %v225_v51 = vperm.slane %v219_v48, %v1218_v19  ;;  %v313_v53 = vperm.slane %v307_v42, %v1202_v11  ;;  %v319_v54 = vsel %vm170_vm0, %v318_v46, %v1256_v39 }
  0x38   : > { %v330_v49 = vrot.slane %v301_v41, 4  ;;  %v243_v52 = vsel %vm170_vm0, %v242_v45, %v201_v34  ;;  %v325_v57 = vperm.slane %v319_v54, %v1202_v11  ;;  %v308_v10 = vrot.slane %v1233_v25, 4  ;;  %p1019_p13 = pneg %p1018_p9 }
  0x39   : > { %v249_v56 = vperm.slane %v243_v52, %v1218_v19  ;;  %v268_v59 = vrot.slane %v225_v51, 4  ;;  %v356_v61 = vrot.slane %v313_v53, 4  ;;  %v333_v1 = vsel %vm170_vm0, %v301_v41, %v332_v50 }
  0x3a   : > { %v331_v58 = vsel %vm170_vm0, %v330_v49, %v289_v40  ;;  %v354_v0 = vrot.slane %v325_v57, 4  ;;  %v320_v14 = vrot.slane %v1256_v39, 4  ;;  %v221_v23 = vsel %vm170_vm0, %v189_v29, %v220_v62  ;;  %p1024_p4 = pnand %p1023_p3, %p1019_p13 }
  0x3b   : > { %v337_v60 = vperm.slane %v331_v58, %v1218_v19  ;;  %v266_v63 = vrot.slane %v249_v56, 4  ;;  %v269_v3 = vsel %vm170_vm0, %v249_v56, %v268_v59  ;;  %v245_v24 = vsel %vm170_vm0, %v213_v35, %v244_v2 }
  0x3c   : > { %654 = vrot.lane.b32.xlu1 %v269_v3, %s1072_s17  ;;  %v355_v18 = vsel %vm170_vm0, %v354_v0, %v313_v53  ;;  %v1291_v30 = vperm.slane %v333_v1, %v1218_v19  ;;  %v357_v31 = vsel %vm170_vm0, %v325_v57, %v356_v61  ;;  %v229_v33 = vperm.slane %v221_v23, %v1218_v19 }
  0x3d   : > { %v267_v17 = vsel %vm170_vm0, %v266_v63, %v225_v51  ;;  %v361_v27 = vperm.slane %v355_v18, %v1218_v19  ;;  %v380_v28 = vrot.slane %v337_v60, 4  ;;  %v185_v34 = vsel %vm170_vm0, %v1193_v7, %v184_v44 }
  0x3e   : > { %650 = vrot.lane.b32.xlu0 %v267_v17, %s1072_s17  ;;  %v197_v29 = vsel %vm170_vm0, %v1205_v12, %v196_v47  ;;  %v209_v35 = vsel %vm170_vm0, %v1208_v13, %v208_v55  ;;  %v253_v37 = vperm.slane %v245_v24, %v1218_v19  ;;  %v1303_v38 = vperm.slane %v173_v16, %v1202_v11  ;;  %v1344_v17 = vld [vmem:[%s1177_s24 + $0x28] sm:$0xff]  ;;  %v1348_v24 = vld [vmem:[%s1177_s24 + $0x38] sm:$0xff] }
  0x3f   : > { %v378_v36 = vrot.slane %v361_v27, 4  ;;  %v1306_v40 = vperm.slane %v185_v34, %v1202_v11  ;;  %v205_v41 = vperm.slane %v197_v29, %v1202_v11  ;;  %v217_v42 = vperm.slane %v209_v35, %v1202_v11  ;;  %v1360_v29 = vld [vmem:[%s1177_s24 + $0x8] sm:$0xff]  ;;  %v1363_v35 = vld [vmem:[%s1177_s24 + $0x78] sm:$0xff] }
  0x40   : > { %v296_v44 = vrot.slane %v1221_v20, 4  ;;  %v381_v45 = vsel %vm170_vm0, %v361_v27, %v380_v28  ;;  %v309_v48 = vsel %vm170_vm0, %v1236_v26, %v308_v10  ;;  %v285_v50 = vsel %vm170_vm0, %v1224_v21, %v284_v43  ;;  %v1351_v27 = vld [vmem:[%s1177_s24 + $0x68] sm:$0xff] }
  0x41   : > { %v379_v46 = vsel %vm170_vm0, %v378_v36, %v337_v60  ;;  %v230_v47 = vrot.slane %v1306_v40, 4  ;;  %v254_v49 = vrot.slane %v217_v42, 4  ;;  %v317_v52 = vperm.slane %v309_v48, %v1202_v11 }
  0x42   : > { %v297_v51 = vsel %vm170_vm0, %v1227_v22, %v296_v44  ;;  %v293_v54 = vperm.slane %v285_v50, %v1202_v11  ;;  %v321_v56 = vsel %vm170_vm0, %v1246_v32, %v320_v14  ;;  %v270_v60 = vrot.slane %v253_v37, 4  ;;  %v1368_v44 = vld [vmem:[%s1177_s24 + $0x18] sm:$0xff] }
  0x43   : > { %v231_v53 = vsel %vm170_vm0, %v230_v47, %v1303_v38  ;;  %v305_v55 = vperm.slane %v297_v51, %v1202_v11  ;;  %v255_v58 = vsel %vm170_vm0, %v254_v49, %v205_v41  ;;  %v329_v59 = vperm.slane %v321_v56, %v1202_v11  ;;  %v1378_v47 = vld [vmem:[%s1177_s24 + $0x58] sm:$0xff]  ;;  %v1399_v56 = vld [vmem:[%s1177_s24 + $0xa8] sm:$0xff] }
  0x44   : > { %656 = vrot.lane.b32.xlu1 %v381_v45, %s1072_s17  ;;  %v1330_v57 = vperm.slane %v231_v53, %v1218_v19  ;;  %v365_v61 = vperm.slane %v357_v31, %v1218_v19  ;;  %v384_v62 = vrot.slane %v1291_v30, 4  ;;  %v272_v63 = vrot.slane %v229_v33, 4 }
  0x45   : > { %v342_v0 = vrot.slane %v305_v55, 4  ;;  %v366_v1 = vrot.slane %v329_v59, 4  ;;  %v271_v2 = vsel %vm170_vm0, %v270_v60, %v229_v33  ;;  %v344_v3 = vrot.slane %v293_v54, 4 }
  0x46   : > { %652 = vrot.lane.b32.xlu0 %v379_v46, %s1072_s17  ;;  %v1339_v10 = vperm.slane %v255_v58, %v1218_v19  ;;  %v276_v14 = vrot.slane %v1330_v57, 4  ;;  %658 = vrot.lane.b32.xlu2 %v271_v2, %s1072_s17  ;;  %v368_v16 = vrot.slane %v317_v52, 4  ;;  %v256_v23 = vrot.slane %v205_v41, 4  ;;  %v1402_v58 = vld [vmem:[%s1177_s24 + $0xb8] sm:$0xff]  ;;  %v1418_v2 = vld [vmem:[%s1177_s24 + $0x88] sm:$0xff] }
  0x47   : > { %v367_v18 = vsel %vm170_vm0, %v366_v1, %v317_v52  ;;  %v385_v28 = vsel %vm170_vm0, %v365_v61, %v384_v62  ;;  %v273_v31 = vsel %vm170_vm0, %v253_v37, %v272_v63  ;;  %v232_v34 = vrot.slane %v1303_v38, 4  ;;  %v1375_v38 = vld [vmem:[%s1177_s24 + $0x48] sm:$0xff] }
  0x48   : > { %v1356_v33 = vperm.slane %v367_v18, %v1218_v19  ;;  %v343_v36 = vsel %vm170_vm0, %v342_v0, %v293_v54  ;;  %v345_v41 = vsel %vm170_vm0, %v305_v55, %v344_v3  ;;  %v382_v43 = vrot.slane %v365_v61, 4  ;;  %v1421_v3 = vld [vmem:[%s1177_s24 + $0x98] sm:$0xff] }
  0x49   : > { %v394_v45 = vrot.slane %v1344_v17, 4  ;;  %v277_v37 = vsel %vm170_vm0, %v1339_v10, %v276_v14  ;;  %v369_v46 = vsel %vm170_vm0, %v329_v59, %v368_v16  ;;  %v406_v48 = vrot.slane %v1348_v24, 4  ;;  %v1424_v14 = vld [vmem:[%s1177_s24 + $0xe8] sm:$0xff] }
  0x4a   : > { %v418_v49 = vrot.slane %v1351_v27, 4  ;;  %v257_v50 = vsel %vm170_vm0, %v217_v42, %v256_v23  ;;  %v383_v51 = vsel %vm170_vm0, %v382_v43, %v1291_v30  ;;  %v430_v53 = vrot.slane %v1363_v35, 4 }
  0x4b   : > { %v395_v52 = vsel %vm170_vm0, %v394_v45, %v1360_v29  ;;  %v1391_v54 = vperm.slane %v343_v36, %v1218_v19  ;;  %v386_v55 = vrot.slane %v1356_v33, 4  ;;  %v233_v42 = vsel %vm170_vm0, %v1306_v40, %v232_v34  ;;  %v1436_v45 = vld [vmem:[%s1177_s24 + $0xf8] sm:$0xff] }
  0x4c   : > { %664 = vrot.lane.b32.xlu1 %v385_v28, %s1072_s17  ;;  %v407_v30 = vsel %vm170_vm0, %v406_v48, %v1368_v44  ;;  %v401_v59 = vperm.slane %v395_v52, %v1202_v11  ;;  %v419_v61 = vsel %vm170_vm0, %v418_v49, %v1375_v38  ;;  %v431_v62 = vsel %vm170_vm0, %v430_v53, %v1378_v47  ;;  %v1449_v52 = vld [vmem:[%s1177_s24 + $0xd8] sm:$0xff] }
  0x4d   : > { %v413_v60 = vperm.slane %v407_v30, %v1202_v11  ;;  %v377_v63 = vperm.slane %v369_v46, %v1218_v19  ;;  %v1412_v40 = vperm.slane %v257_v50, %v1218_v19  ;;  %v425_v0 = vperm.slane %v419_v61, %v1202_v11  ;;  %1778 = vst [vmem:[#allocation10_spill] sm:$0xff] %v1436_v45 }
  0x4e   : > { %662 = vrot.lane.b32.xlu0 %v273_v31, %s1072_s17  ;;  %660 = vrot.lane.b32.xlu2 %v383_v51, %s1072_s17  ;;  %v437_v1 = vperm.slane %v431_v62, %v1202_v11  ;;  %v274_v18 = vrot.slane %v1339_v10, 4  ;;  %v506_v23 = vrot.slane %v1399_v56, 4  ;;  %v518_v28 = vrot.slane %v1402_v58, 4  ;;  %1779 = vst [vmem:[#allocation11_spill] sm:$0xff] %v1449_v52 }
  0x4f   : > { %v442_v16 = vrot.slane %v413_v60, 4  ;;  %v387_v31 = vsel %vm170_vm0, %v386_v55, %v1391_v54  ;;  %v353_v34 = vperm.slane %v345_v41, %v1218_v19  ;;  %v1433_v36 = vperm.slane %v233_v42, %v1218_v19  ;;  %v1446_v41 = vld [vmem:[%s1177_s24 + $0xc8] sm:$0xff] }
  0x50   : > { %v466_v43 = vrot.slane %v437_v1, 4  ;;  %v507_v10 = vsel %vm170_vm0, %v506_v23, %v1418_v2  ;;  %v519_v48 = vsel %vm170_vm0, %v518_v28, %v1421_v3  ;;  %v530_v49 = vrot.slane %v1424_v14, 4 }
  0x51   : > { %v443_v46 = vsel %vm170_vm0, %v442_v16, %v401_v59  ;;  %v390_v50 = vrot.slane %v377_v63, 4  ;;  %v1452_v53 = vperm.slane %v507_v10, %v1202_v11  ;;  %v1455_v55 = vperm.slane %v519_v48, %v1202_v11 }
  0x52   : > { %v467_v51 = vsel %vm170_vm0, %v466_v43, %v425_v0  ;;  %v278_v42 = vrot.slane %v1412_v40, 4  ;;  %v275_v61 = vsel %vm170_vm0, %v274_v18, %v1330_v57  ;;  %v542_v62 = vrot.slane %v1436_v45, 4 }
  0x53   : > { %v473_v30 = vperm.slane %v467_v51, %v1218_v19  ;;  %v449_v16 = vperm.slane %v443_v46, %v1218_v19  ;;  %v392_v23 = vrot.slane %v353_v34, 4  ;;  %v554_v28 = vrot.slane %v1455_v55, 4 }
  0x54   : > { %670 = vrot.lane.b32.xlu1 %v277_v37, %s1072_s17  ;;  %v444_v43 = vrot.slane %v401_v59, 4  ;;  %v531_v37 = vsel %vm170_vm0, %v530_v49, %v1446_v41  ;;  %v543_v10 = vsel %vm170_vm0, %v542_v62, %v1449_v52  ;;  %v388_v46 = vrot.slane %v1391_v54, 4 }
  0x55   : > { %v549_v57 = vperm.slane %v543_v10, %v1202_v11  ;;  %v555_v18 = vsel %vm170_vm0, %v554_v28, %v1452_v53  ;;  %v391_v48 = vsel %vm170_vm0, %v390_v50, %v353_v34  ;;  %v490_v51 = vrot.slane %v473_v30, 4 }
  0x56   : > { %668 = vrot.lane.b32.xlu0 %v387_v31, %s1072_s17  ;;  %666 = vrot.lane.b32.xlu2 %v275_v61, %s1072_s17  ;;  %v492_v31 = vrot.slane %v449_v16, 4  ;;  %v532_v59 = vrot.slane %v1446_v41, 4  ;;  %v468_v32 = vrot.slane %v425_v0, 4  ;;  %v279_v49 = vsel %vm170_vm0, %v278_v42, %v1433_v36 }
  0x57   : > { %v393_v62 = vsel %vm170_vm0, %v377_v63, %v392_v23  ;;  %v1481_v61 = vperm.slane %v555_v18, %v1218_v19  ;;  %v445_v10 = vsel %vm170_vm0, %v413_v60, %v444_v43  ;;  %v537_v28 = vperm.slane %v531_v37, %v1202_v11 }
  0x58   : > { %v544_v54 = vrot.slane %v1449_v52, 4  ;;  %v578_v26 = vrot.slane %v549_v57, 4  ;;  %v1488_v50 = vsel %vm170_vm0, %v473_v30, %v492_v31  ;;  %v389_v0 = vsel %vm170_vm0, %v1356_v33, %v388_v46 }
  0x59   : > { %v508_v63 = vrot.slane %v1418_v2, 4  ;;  %v520_v42 = vrot.slane %v1421_v3, 4  ;;  %v491_v60 = vsel %vm170_vm0, %v490_v51, %v449_v16  ;;  %v1497_v23 = vperm.slane %v445_v10, %v1218_v19 }
  0x5a   : > { %v1500_v43 = vsel %vm170_vm0, %v437_v1, %v468_v32  ;;  %v533_v30 = vsel %vm170_vm0, %v1424_v14, %v532_v59  ;;  %v604_v33 = vrot.slane %v1481_v61, 4  ;;  %v580_v37 = vrot.slane %v537_v28, 4 }
  0x5b   : > { %v509_v18 = vsel %vm170_vm0, %v1399_v56, %v508_v63  ;;  %v521_v16 = vsel %vm170_vm0, %v1402_v58, %v520_v42  ;;  %v579_v31 = vsel %vm170_vm0, %v578_v26, %v537_v28  ;;  %v280_v46 = vrot.slane %v1433_v36, 4 }
  0x5c   : > { %676 = vrot.lane.b32.xlu1 %v391_v48, %s1072_s17  ;;  %v517_v32 = vperm.slane %v509_v18, %v1202_v11  ;;  %v529_v1 = vperm.slane %v521_v16, %v1202_v11  ;;  %v541_v48 = vperm.slane %v533_v30, %v1202_v11  ;;  %v545_v51 = vsel %vm170_vm0, %v1436_v45, %v544_v54 }
  0x5d   : > { %v396_v59 = vrot.slane %v1360_v29, 4  ;;  %v553_v10 = vperm.slane %v545_v51, %v1202_v11  ;;  %v420_v36 = vrot.slane %v1375_v38, 4  ;;  %v432_v28 = vrot.slane %v1378_v47, 4 }
  0x5e   : > { %674 = vrot.lane.b32.xlu0 %v279_v49, %s1072_s17  ;;  %672 = vrot.lane.b32.xlu2 %v389_v0, %s1072_s17  ;;  %v408_v49 = vrot.slane %v1368_v44, 4  ;;  %v566_v26 = vrot.slane %v529_v1, 4  ;;  %v585_v63 = vperm.slane %v579_v31, %v1218_v19  ;;  %v581_v0 = vsel %vm170_vm0, %v549_v57, %v580_v37 }
  0x5f   : > { %v397_v42 = vsel %vm170_vm0, %v1344_v17, %v396_v59  ;;  %v590_v18 = vrot.slane %v553_v10, 4  ;;  %v281_v34 = vsel %vm170_vm0, %v1412_v40, %v280_v46  ;;  %v421_v57 = vsel %vm170_vm0, %v1351_v27, %v420_v36 }
  0x60   : > { %v409_v54 = vsel %vm170_vm0, %v1348_v24, %v408_v49  ;;  %v567_v30 = vsel %vm170_vm0, %v566_v26, %v517_v32  ;;  %v405_v16 = vperm.slane %v397_v42, %v1202_v11  ;;  %v433_v37 = vsel %vm170_vm0, %v1363_v35, %v432_v28 }
  0x61   : > { %v417_v51 = vperm.slane %v409_v54, %v1202_v11  ;;  %v573_v31 = vperm.slane %v567_v30, %v1218_v19  ;;  %v591_v59 = vsel %vm170_vm0, %v590_v18, %v541_v48  ;;  %v429_v49 = vperm.slane %v421_v57, %v1202_v11 }
  0x62   : > { %v441_v26 = vperm.slane %v433_v37, %v1202_v11  ;;  %v605_v40 = vsel %vm170_vm0, %v585_v63, %v604_v33  ;;  %v597_v46 = vperm.slane %v591_v59, %v1218_v19  ;;  %v456_v54 = vrot.slane %v405_v16, 4 }
  0x63   : > { %v454_v42 = vrot.slane %v417_v51, 4  ;;  %v612_v36 = vrot.slane %v573_v31, 4  ;;  %v480_v45 = vrot.slane %v429_v49, 4  ;;  %v602_v37 = vrot.slane %v585_v63, 4 }
  0x64   : > { %682 = vrot.lane.b32.xlu1 %v491_v60, %s1072_s17  ;;  %v478_v28 = vrot.slane %v441_v26, 4  ;;  %v568_v60 = vrot.slane %v517_v32, 4  ;;  %v610_v18 = vrot.slane %v597_v46, 4  ;;  %v457_v11 = vsel %vm170_vm0, %v417_v51, %v456_v54 }
  0x65   : > { %v455_v30 = vsel %vm170_vm0, %v454_v42, %v405_v16  ;;  %v465_v59 = vperm.slane %v457_v11, %v1218_v19  ;;  %v481_v52 = vsel %vm170_vm0, %v441_v26, %v480_v45  ;;  %v477_v63 = vperm.slane %v1500_v43, %v1218_v19 }
  0x66   : > { %680 = vrot.lane.b32.xlu0 %v393_v62, %s1072_s17  ;;  %678 = vrot.lane.b32.xlu2 %v281_v34, %s1072_s17  ;;  %v461_v57 = vperm.slane %v455_v30, %v1218_v19  ;;  %v613_v62 = vsel %vm170_vm0, %v597_v46, %v612_v36  ;;  %v479_v33 = vsel %vm170_vm0, %v478_v28, %v429_v49  ;;  %v592_v46 = vrot.slane %v541_v48, 4 }
  0x67   : > { %v611_v16 = vsel %vm170_vm0, %v610_v18, %v573_v31  ;;  %v485_v32 = vperm.slane %v479_v33, %v1218_v19  ;;  %v489_v34 = vperm.slane %v481_v52, %v1218_v19  ;;  %v569_v42 = vsel %vm170_vm0, %v529_v1, %v568_v60 }
  0x68   : > { %v589_v30 = vperm.slane %v581_v0, %v1218_v19  ;;  %v577_v51 = vperm.slane %v569_v42, %v1218_v19  ;;  %v504_v54 = vrot.slane %v465_v59, 4  ;;  %v1780_v49 = vrot.slane %v1452_v53, 4 }
  0x69   : > { %v498_v31 = vrot.slane %v485_v32, 4  ;;  %v502_v26 = vrot.slane %v489_v34, 4  ;;  %v603_v52 = vsel %vm170_vm0, %v602_v37, %v1481_v61  ;;  %v593_v1 = vsel %vm170_vm0, %v553_v10, %v592_v46 }
  0x6a   : > { %v557_v45 = vsel %vm170_vm0, %v1455_v55, %v1780_v49  ;;  %v616_v0 = vrot.slane %v577_v51, 4  ;;  %v505_v48 = vsel %vm170_vm0, %v489_v34, %v504_v54  ;;  %v496_v53 = vrot.slane %v1497_v23, 4 }
  0x6b   : > { %v499_v43 = vsel %vm170_vm0, %v498_v31, %v461_v57  ;;  %v503_v55 = vsel %vm170_vm0, %v502_v26, %v465_v59  ;;  %v601_v36 = vperm.slane %v593_v1, %v1218_v19  ;;  %v606_v28 = vrot.slane %v589_v30, 4 }
  0x6c   : > { %688 = vrot.lane.b32.xlu1 %v605_v40, %s1072_s17  ;;  %v565_v40 = vperm.slane %v557_v45, %v1218_v19  ;;  %v500_v61 = vrot.slane %v461_v57, 4  ;;  %v494_v18 = vrot.slane %v477_v63, 4  ;;  %v497_v11 = vsel %vm170_vm0, %v477_v63, %v496_v53 }
  0x6d   : > { %v617_v10 = vsel %vm170_vm0, %v601_v36, %v616_v0  ;;  %v614_v60 = vrot.slane %v601_v36, 4 }
  0x6e   : > { %686 = vrot.lane.b32.xlu0 %v1488_v50, %s1072_s17  ;;  %684 = vrot.lane.b32.xlu2 %v603_v52, %s1072_s17  ;;  %v501_v50 = vsel %vm170_vm0, %v485_v32, %v500_v61  ;;  %v607_v37 = vsel %vm170_vm0, %v606_v28, %v565_v40  ;;  %v495_v19 = vsel %vm170_vm0, %v494_v18, %v1497_v23  ;;  %v608_v57 = vrot.slane %v565_v40, 4 }
  0x6f   : > { %v615_v33 = vsel %vm170_vm0, %v614_v60, %v577_v51 }
  0x70   : > { %v609_v59 = vsel %vm170_vm0, %v589_v30, %v608_v57 }
  0x74   : > { %694 = vrot.lane.b32.xlu1 %v497_v11, %s1072_s17 }
  0x76   : > { %692 = vrot.lane.b32.xlu0 %v607_v37, %s1072_s17  ;;  %690 = vrot.lane.b32.xlu2 %v495_v19, %s1072_s17  ;;  %v1781_v37 = vld [vmem:[#allocation8_spill] sm:$0xff] }
  0x7c   : > { %700 = vrot.lane.b32.xlu1 %v611_v16, %s1072_s17 }
  0x7e   : > { %698 = vrot.lane.b32.xlu0 %v499_v43, %s1072_s17  ;;  %696 = vrot.lane.b32.xlu2 %v609_v59, %s1072_s17  ;;  %v1783_v59 = vld [vmem:[#allocation10_spill] sm:$0xff] }
  0x84   : > { %706 = vrot.lane.b32.xlu1 %v503_v55, %s1072_s17 }
  0x86   : > { %704 = vrot.lane.b32.xlu0 %v613_v62, %s1072_s17  ;;  %702 = vrot.lane.b32.xlu2 %v501_v50, %s1072_s17 }
  0x8c   : > { %712 = vrot.lane.b32.xlu1 %v617_v10, %s1072_s17 }
  0x8e   : > { %710 = vrot.lane.b32.xlu0 %v505_v48, %s1072_s17  ;;  %708 = vrot.lane.b32.xlu2 %v615_v33, %s1072_s17 }
  0xa0   : > { %v659_v23 = vpop.permute.xlu2 %658 }
  0xa1   : > { %v751_v16 = vsel %vm746_vm1, %v1190_v6, %v659_v23 }
  0xa2   : > { %784 = vst.msk [vmem:[%s1603_s25 + $0x20] sm:$0xff] %vm779_vm2, %v751_v16 }
  0xa8   : > { %v661_v62 = vpop.permute.xlu2 %660 }
  0xa9   : > { %v752_v32 = vsel %vm746_vm1, %v1344_v17, %v661_v62  ;;  %v1784_v62 = vld [vmem:[#allocation9_spill] sm:$0xff] }
  0xaa   : > { %785 = vst.msk [vmem:[%s1603_s25 + $0x28] sm:$0xff] %vm779_vm2, %v752_v32 }
  0xae   : > { %v655_v34 = vpop.permute.xlu1 %654 }
  0xaf   : > { %v749_v6 = vsel %vm746_vm1, %v1187_v5, %v655_v34 }
  0xb0   : > { %v651_v42 = vpop.permute.xlu0 %650  ;;  %782 = vst.msk [vmem:[%s1603_s25 + $0x10] sm:$0xff] %vm779_vm2, %v749_v6  ;;  %v667_v51 = vpop.permute.xlu2 %666 }
  0xb1   : > { %v747_v30 = vsel %vm746_vm1, %v1184_v4, %v651_v42  ;;  %v755_v17 = vsel %vm746_vm1, %v1196_v8, %v667_v51 }
  0xb2   : > { %780 = vst.msk [vmem:[%s1603_s25] sm:$0xff] %vm779_vm2, %v747_v30 }
  0xb3   : > { %788 = vst.msk [vmem:[%s1603_s25 + $0x40] sm:$0xff] %vm779_vm2, %v755_v17 }
  0xb6   : > { %v657_v46 = vpop.permute.xlu1 %656 }
  0xb7   : > { %v750_v5 = vsel %vm746_vm1, %v1368_v44, %v657_v46 }
  0xb8   : > { %v653_v54 = vpop.permute.xlu0 %652  ;;  %783 = vst.msk [vmem:[%s1603_s25 + $0x18] sm:$0xff] %vm779_vm2, %v750_v5  ;;  %v673_v63 = vpop.permute.xlu2 %672 }
  0xb9   : > { %v748_v4 = vsel %vm746_vm1, %v1360_v29, %v653_v54  ;;  %v758_v8 = vsel %vm746_vm1, %v1378_v47, %v673_v63 }
  0xba   : > { %781 = vst.msk [vmem:[%s1603_s25 + $0x8] sm:$0xff] %vm779_vm2, %v748_v4 }
  0xbb   : > { %791 = vst.msk [vmem:[%s1603_s25 + $0x58] sm:$0xff] %vm779_vm2, %v758_v8 }
  0xbe   : > { %v665_v49 = vpop.permute.xlu1 %664 }
  0xbf   : > { %v754_v44 = vsel %vm746_vm1, %v1348_v24, %v665_v49 }
  0xc0   : > { %v663_v45 = vpop.permute.xlu0 %662  ;;  %787 = vst.msk [vmem:[%s1603_s25 + $0x38] sm:$0xff] %vm779_vm2, %v754_v44  ;;  %v679_v31 = vpop.permute.xlu2 %678 }
  0xc1   : > { %v753_v29 = vsel %vm746_vm1, %v1193_v7, %v663_v45  ;;  %v761_v47 = vsel %vm746_vm1, %v1208_v13, %v679_v31 }
  0xc2   : > { %786 = vst.msk [vmem:[%s1603_s25 + $0x30] sm:$0xff] %vm779_vm2, %v753_v29 }
  0xc3   : > { %794 = vst.msk [vmem:[%s1603_s25 + $0x70] sm:$0xff] %vm779_vm2, %v761_v47 }
  0xc6   : > { %v671_v26 = vpop.permute.xlu1 %670 }
  0xc7   : > { %v757_v24 = vsel %vm746_vm1, %v1199_v9, %v671_v26 }
  0xc8   : > { %v669_v52 = vpop.permute.xlu0 %668  ;;  %790 = vst.msk [vmem:[%s1603_s25 + $0x50] sm:$0xff] %vm779_vm2, %v757_v24  ;;  %v685_v1 = vpop.permute.xlu2 %684 }
  0xc9   : > { %v756_v7 = vsel %vm746_vm1, %v1375_v38, %v669_v52  ;;  %v764_v13 = vsel %vm746_vm1, %v1418_v2, %v685_v1 }
  0xca   : > { %789 = vst.msk [vmem:[%s1603_s25 + $0x48] sm:$0xff] %vm779_vm2, %v756_v7 }
  0xcb   : > { %797 = vst.msk [vmem:[%s1603_s25 + $0x88] sm:$0xff] %vm779_vm2, %v764_v13 }
  0xce   : > { %v677_v0 = vpop.permute.xlu1 %676 }
  0xcf   : > { %v760_v9 = vsel %vm746_vm1, %v1351_v27, %v677_v0 }
  0xd0   : > { %v675_v48 = vpop.permute.xlu0 %674  ;;  %793 = vst.msk [vmem:[%s1603_s25 + $0x68] sm:$0xff] %vm779_vm2, %v760_v9  ;;  %v691_v53 = vpop.permute.xlu2 %690 }
  0xd1   : > { %v759_v38 = vsel %vm746_vm1, %v1205_v12, %v675_v48  ;;  %v767_v2 = vsel %vm746_vm1, %v1224_v21, %v691_v53 }
  0xd2   : > { %792 = vst.msk [vmem:[%s1603_s25 + $0x60] sm:$0xff] %vm779_vm2, %v759_v38 }
  0xd3   : > { %800 = vst.msk [vmem:[%s1603_s25 + $0xa0] sm:$0xff] %vm779_vm2, %v767_v2 }
  0xd6   : > { %v683_v43 = vpop.permute.xlu1 %682 }
  0xd7   : > { %v763_v27 = vsel %vm746_vm1, %v1212_v15, %v683_v43 }
  0xd8   : > { %v681_v55 = vpop.permute.xlu0 %680  ;;  %796 = vst.msk [vmem:[%s1603_s25 + $0x80] sm:$0xff] %vm779_vm2, %v763_v27  ;;  %v697_v36 = vpop.permute.xlu2 %696 }
  0xd9   : > { %v762_v12 = vsel %vm746_vm1, %v1363_v35, %v681_v55  ;;  %v770_v21 = vsel %vm746_vm1, %v1402_v58, %v697_v36 }
  0xda   : > { %795 = vst.msk [vmem:[%s1603_s25 + $0x78] sm:$0xff] %vm779_vm2, %v762_v12 }
  0xdb   : > { %803 = vst.msk [vmem:[%s1603_s25 + $0xb8] sm:$0xff] %vm779_vm2, %v770_v21 }
  0xde   : > { %v689_v40 = vpop.permute.xlu1 %688 }
  0xdf   : > { %v766_v15 = vsel %vm746_vm1, %v1421_v3, %v689_v40 }
  0xe0   : > { %v687_v28 = vpop.permute.xlu0 %686  ;;  %799 = vst.msk [vmem:[%s1603_s25 + $0x98] sm:$0xff] %vm779_vm2, %v766_v15  ;;  %v703_v61 = vpop.permute.xlu2 %702 }
  0xe1   : > { %v765_v35 = vsel %vm746_vm1, %v1221_v20, %v687_v28  ;;  %v773_v58 = vsel %vm746_vm1, %v1256_v39, %v703_v61 }
  0xe2   : > { %798 = vst.msk [vmem:[%s1603_s25 + $0x90] sm:$0xff] %vm779_vm2, %v765_v35 }
  0xe3   : > { %806 = vst.msk [vmem:[%s1603_s25 + $0xd0] sm:$0xff] %vm779_vm2, %v773_v58 }
  0xe6   : > { %v695_v10 = vpop.permute.xlu1 %694 }
  0xe7   : > { %v769_v3 = vsel %vm746_vm1, %v1227_v22, %v695_v10 }
  0xe8   : > { %v693_v60 = vpop.permute.xlu0 %692  ;;  %802 = vst.msk [vmem:[%s1603_s25 + $0xb0] sm:$0xff] %vm779_vm2, %v769_v3  ;;  %v709_v18 = vpop.permute.xlu2 %708 }
  0xe9   : > { %v768_v20 = vsel %vm746_vm1, %v1399_v56, %v693_v60  ;;  %v776_v39 = vsel %vm746_vm1, %v1424_v14, %v709_v18 }
  0xea   : > { %801 = vst.msk [vmem:[%s1603_s25 + $0xa8] sm:$0xff] %vm779_vm2, %v768_v20 }
  0xeb   : > { %809 = vst.msk [vmem:[%s1603_s25 + $0xe8] sm:$0xff] %vm779_vm2, %v776_v39 }
  0xee   : > { %v701_v50 = vpop.permute.xlu1 %700 }
  0xef   : > { %v772_v22 = vsel %vm746_vm1, %v1446_v41, %v701_v50  ;;  %v1782_v41 = vld [vmem:[#allocation11_spill] sm:$0xff] }
  0xf0   : > { %v699_v11 = vpop.permute.xlu0 %698  ;;  %805 = vst.msk [vmem:[%s1603_s25 + $0xc8] sm:$0xff] %vm779_vm2, %v772_v22 }
  0xf1   : > { %v771_v56 = vsel %vm746_vm1, %v1233_v25, %v699_v11 }
  0xf2   : > { %804 = vst.msk [vmem:[%s1603_s25 + $0xc0] sm:$0xff] %vm779_vm2, %v771_v56 }
  0xf6   : > { %v707_v33 = vpop.permute.xlu1 %706 }
  0xf7   : > { %v775_v14 = vsel %vm746_vm1, %v1781_v37, %v707_v33 }
  0xf8   : > { %v705_v19 = vpop.permute.xlu0 %704  ;;  %808 = vst.msk [vmem:[%s1603_s25 + $0xe0] sm:$0xff] %vm779_vm2, %v775_v14 }
  0xf9   : > { %v774_v57 = vsel %vm746_vm1, %v1782_v41, %v705_v19 }
  0xfa   : > { %807 = vst.msk [vmem:[%s1603_s25 + $0xd8] sm:$0xff] %vm779_vm2, %v774_v57 }
  0xfe   : > { %v713_v25 = vpop.permute.xlu1 %712 }
  0xff   : > { %v778_v23 = vsel %vm746_vm1, %v1783_v59, %v713_v25 }
 0x100   : > { %v711_v16 = vpop.permute.xlu0 %710  ;;  %811 = vst.msk [vmem:[%s1603_s25 + $0xf8] sm:$0xff] %vm779_vm2, %v778_v23 }
 0x101   : > { %v777_v32 = vsel %vm746_vm1, %v1784_v62, %v711_v16 }
 0x102   : > { %810 = vst.msk [vmem:[%s1603_s25 + $0xf0] sm:$0xff] %vm779_vm2, %v777_v32 }
 0x103   : > { %1027 = shalt.err (!%p1024_p4)
}
 0x104   : > { %s1073_s20 = smov 128   ;;  %s1074_s21 = smov 8  }
 0x105   : > { %919 = dma.vmem_to_hbm [thread:$0]  (%p1135_p11), %s826_s10, 4096, %s828_s30, %s813_s2, %s1073_s20, %s1073_s20, %s1074_s21  }
 0x106 PF: > { %s842_s22 = sand.u32 1, %s1054_s6   ;;  %p1785_p7 = scmp.ge.s32.totalorder %s1066_s9, 2 }
 0x107   : > { %s843_s23 = scalar_lea.sflag [#allocation4], %s842_s22 }
 0x108   : > { %p926_p5 = pnand %p1785_p7, %p1139_p12 }
 0x10a   : > { %p927_p8 = pneg %p926_p5 }
 0x10c   : > { %1049 = dma.done.wait (%p927_p8), %s843_s23, 4096  }
 0x10d   : > { %1051 = vsyncadd (%p927_p8), %s843_s23, 4294963200  ;;  %p14_p10 = scmp.ge.s32.totalorder %s1110_s12, 4   ;;  %s1786_s6 = smov %s1058_s7 }
 0x10e   : > { %s1787_s7 = smov %s1062_s8  ;;  %s1788_s8 = smov %s1122_s15 }
 0x10f   : > { %s1789_s9 = smov %s1110_s12  ;;  %16 = sbr.rel (!%p14_p10) target bundleno = 5 (0x5), region = 69 }
 0x114   :  { %849 = vsyncpa [#allocation3], 1 }
 0x115   :  { %851 = vsyncpa [#allocation3 + $0x1], 1 }
 0x116   :  { %852 = vsyncpa [#allocation4], 1 }
 0x117   :  { %854 = vsyncpa [#allocation4 + $0x1], 1 }

</bundles_post_ra>
